<compile_context>
chip_gen: v5e
topology: v5e:2x2
jax: 0.10.0
libtpu: 0.0.40
codegen_flags: <defaults>
</compile_context>

<pallas_src>
import functools

import jax
import jax.numpy as jnp
from jax import lax
from jax.experimental import pallas as pl
from jax.experimental.pallas import tpu as pltpu


def _causal_block_kernel(x_ref, w1_ref, w2_ref, out_ref, *,
                         K, dilation, L, NB, matmul_dtype):
    """Fused TCN residual block for one (C, NB*L) batch slab.

    x_ref  : (C, NB*L)      channels on sublanes, batch*time on lanes
    w1_ref : (C, K*C + 1)   tap-fused conv1 weight, bias in the last column
    w2_ref : (C, K*C + 1)   tap-fused conv2 weight, bias in the last column
    out_ref: (C, NB*L)
    """
    C = x_ref.shape[0]
    NL = NB * L
    P = (K - 1) * dilation

    x = x_ref[...].astype(jnp.float32)          # (C, NL)
    w1 = w1_ref[...]
    w2 = w2_ref[...]

    # Lane position within each length-L batch segment; used to zero the lanes
    # of a shifted tap that would otherwise bleed in from the previous segment
    # (i.e. the causal left-pad, realised as a mask instead of a VMEM pad).
    lane_in_seg = lax.broadcasted_iota(jnp.int32, (C, NL), 1) % L
    ones_row = jnp.ones((1, NL), jnp.float32)

    def dilated_taps(z):
        """Build the K causal dilated taps + bias row entirely in registers.

        Tap k of the causal conv needs z shifted right by (K-1-k)*dilation
        along time, with zeros shifted in (the chomped left pad)."""
        if P > 0:
            zpad = jnp.concatenate(
                [jnp.zeros((C, P), jnp.float32), z], axis=-1)   # (C, P+NL)
        else:
            zpad = z
        taps = []
        for k in range(K):
            shift = (K - 1 - k) * dilation                      # 0 .. P
            t = zpad[:, P - shift: P - shift + NL]              # right shift
            if shift > 0:
                # Kill cross-segment bleed: first `shift` samples of every
                # batch segment come from the zero pad, not the previous item.
                t = jnp.where(lane_in_seg >= shift, t, 0.0)
            taps.append(t)
        taps.append(ones_row)                                   # bias row
        return jnp.concatenate(taps, axis=0)                    # (K*C+1, NL)

    def conv(w, z):
        # One MXU dot per conv over the whole batch slab; bias comes along via
        # the appended ones-row / bias-column.  Accumulation stays f32.
        return jnp.dot(w.astype(matmul_dtype),
                       dilated_taps(z).astype(matmul_dtype),
                       preferred_element_type=jnp.float32)

    h1 = jnp.maximum(conv(w1, x), 0.0)           # conv1 + chomp + bias + ReLU
    h2 = jnp.maximum(conv(w2, h1), 0.0)          # conv2 + chomp + bias + ReLU
    # Residual + final ReLU (Dropout == identity in eval mode).
    out_ref[...] = jnp.maximum(h2 + x, 0.0).astype(out_ref.dtype)


def _pick_batch_block(N, L, Cin, Cout, itemsize=4, vmem_budget_bytes=24 << 20):
    """Prefer a single grid step (grid is a serial loop on 1-TC v5e/v6e and the
    per-step work here is tiny); split the batch only if the double-buffered
    in/out slabs would overflow a conservative scoped-VMEM budget (v7x has
    64 MiB physical / 32 MiB default scoped), and only into lane-dense
    (multiple-of-128 lane) chunks so stores stay unmasked."""
    def slab_bytes(nb):
        return 2 * (Cin + Cout) * nb * L * itemsize   # 2x double-buffer, in+out
    if slab_bytes(N) <= vmem_budget_bytes:
        return N
    for nb in range(N - 1, 0, -1):
        if N % nb == 0 and (nb * L) % 128 == 0 and slab_bytes(nb) <= vmem_budget_bytes:
            return nb
    # TODO(synk): for very long L add an L-tiling grid axis with a P-sample halo
    # (overlapping windows) and raise vmem_limit_bytes; unnecessary at these sizes.
    return N


def causal_conv_block(x_ncl, w1, b1, w2, b2, *,
                      kernel_size, stride, dilation, padding,
                      batch_block=None, use_bf16_operands=False):
    """x_ncl: (N, Cin, L) float32.  w*: (Cout, Cin, K) effective (post weight-norm)."""
    assert stride == 1, "TCN causal block uses stride=1"
    assert padding == (kernel_size - 1) * dilation, "causal padding expected"
    N, Cin, L = x_ncl.shape
    Cout = w1.shape[0]
    assert Cin == Cout, "residual add requires n_inputs == n_outputs"
    K = kernel_size

    NB = batch_block if batch_block is not None else _pick_batch_block(N, L, Cin, Cout)
    assert N % NB == 0
    assert NB == N or (NB * L) % 128 == 0, "batch blocks must be lane-dense"

    # Layout plumbing (not compute): fold batch into the lane axis so the kernel
    # loads/stores one lane-dense (C, NB*L) slab per step.
    x_slab = jnp.transpose(x_ncl, (1, 0, 2)).reshape(Cin, N * L)

    # (Cout, Cin, K) -> (Cout, K*Cin), tap-major / channel-minor to match the
    # im2col stacking in the kernel; bias folded in as an extra trailing column.
    w1_aug = jnp.concatenate(
        [jnp.transpose(w1, (0, 2, 1)).reshape(Cout, K * Cin), b1.reshape(Cout, 1)], axis=1)
    w2_aug = jnp.concatenate(
        [jnp.transpose(w2, (0, 2, 1)).reshape(Cout, K * Cout), b2.reshape(Cout, 1)], axis=1)

    matmul_dtype = jnp.bfloat16 if use_bf16_operands else jnp.float32
    kernel = functools.partial(_causal_block_kernel, K=K, dilation=dilation,
                               L=L, NB=NB, matmul_dtype=matmul_dtype)

    out_slab = pl.pallas_call(
        kernel,
        out_shape=jax.ShapeDtypeStruct((Cout, N * L), x_ncl.dtype),
        grid_spec=pltpu.PrefetchScalarGridSpec(
            num_scalar_prefetch=0,
            grid=(N // NB,),
            in_specs=[
                pl.BlockSpec((Cin, NB * L), lambda b: (0, b)),        # x slab
                pl.BlockSpec((Cout, K * Cin + 1), lambda b: (0, 0)),  # w1 (+bias)
                pl.BlockSpec((Cout, K * Cout + 1), lambda b: (0, 0)),  # w2 (+bias)
            ],
            out_specs=pl.BlockSpec((Cout, NB * L), lambda b: (0, b)),
        ),
        compiler_params=pltpu.CompilerParams(
            dimension_semantics=("parallel",)),
    )(x_slab, w1_aug, w2_aug)

    # (Cout, N*L) -> (N, Cout, L)
    return jnp.transpose(out_slab.reshape(Cout, N, L), (1, 0, 2))


def weight_norm_weight(v, g):
    """PyTorch weight_norm with default dim=0: per-output-channel norm."""
    norm = jnp.sqrt(jnp.sum(v * v, axis=(1, 2), keepdims=True))
    return (g.reshape(-1, 1, 1) / norm) * v


def reference_block(x, w1, b1, w2, b2, *, dilation, padding):
    """Plain-JAX reference (mirrors the PyTorch forward in eval mode)."""
    def conv_chomp_relu(inp, w, b):
        y = lax.conv_general_dilated(
            inp, w, window_strides=(1,), padding=[(padding, padding)],
            rhs_dilation=(dilation,),
            dimension_numbers=("NCH", "OIH", "NCH"))
        y = y[:, :, :y.shape[2] - padding]          # Chomp1d
        return jnp.maximum(y + b.reshape(1, -1, 1), 0.0)
    h1 = conv_chomp_relu(x, w1, b1)
    h2 = conv_chomp_relu(h1, w2, b2)
    return jnp.maximum(h2 + x, 0.0)


if __name__ == "__main__":
    # Module hyper-parameters (residual requires n_inputs == n_outputs).
    n_inputs = n_outputs = 8
    kernel_size = 3
    stride = 1
    dilation = 2
    padding = (kernel_size - 1) * dilation          # = 4
    dropout = 0.1                                   # identity in eval mode
    N, L = 2, 16

    key = jax.random.PRNGKey(0)
    k_x, k_v1, k_g1, k_b1, k_v2, k_g2, k_b2 = jax.random.split(key, 7)

    x = jax.random.normal(k_x, (N, n_inputs, L), dtype=jnp.float32)

    # weight_norm parameters (v, g) + bias for each conv, initialized in-script.
    v1 = 0.1 * jax.random.normal(k_v1, (n_outputs, n_inputs, kernel_size), jnp.float32)
    g1 = 1.0 + 0.1 * jax.random.normal(k_g1, (n_outputs,), jnp.float32)
    b1 = 0.1 * jax.random.normal(k_b1, (n_outputs,), jnp.float32)
    v2 = 0.1 * jax.random.normal(k_v2, (n_outputs, n_outputs, kernel_size), jnp.float32)
    g2 = 1.0 + 0.1 * jax.random.normal(k_g2, (n_outputs,), jnp.float32)
    b2 = 0.1 * jax.random.normal(k_b2, (n_outputs,), jnp.float32)

    w1 = weight_norm_weight(v1, g1)
    w2 = weight_norm_weight(v2, g2)

    out = causal_conv_block(
        x, w1, b1, w2, b2,
        kernel_size=kernel_size, stride=stride,
        dilation=dilation, padding=padding)
    out = jax.block_until_ready(out)

    ref = reference_block(x, w1, b1, w2, b2, dilation=dilation, padding=padding)
    assert out.shape == (N, n_outputs, L)
    # Kernel dot and reference conv both use the default TPU f32 matmul path;
    # tolerance slightly loosened only to hedge the bias-fold into the MXU dot.
    assert jnp.allclose(out, ref, atol=1e-4, rtol=1e-4)

    # TODO(synk): nn.Dropout is implemented as identity (eval mode); training-mode
    # stochastic dropout would use pltpu.prng_seed/prng_random_bits in-kernel.
    print("KERNEL_OK")
</pallas_src>

<mosaic_0001>
module attributes {stable_mosaic.version = 11 : i64} {
  func.func @_causal_block_kernel(%arg0: i32, %arg1: memref<8x32xf32, #tpu.memory_space<vmem>>, %arg2: memref<8x25xf32, #tpu.memory_space<vmem>>, %arg3: memref<8x25xf32, #tpu.memory_space<vmem>>, %arg4: memref<8x32xf32, #tpu.memory_space<vmem>>) attributes {dimension_semantics = [#tpu.dimension_semantics<parallel>], iteration_bounds = array<i64: 1>, scalar_prefetch = 0 : i64, scratch_operands = 0 : i64, tpu.core_type = #tpu.core_type<tc>, window_params = [{transform_indices = @transform_0, window_bounds = array<i64: 8, 32>}, {pipeline_mode = #tpu.pipeline_mode<synchronous>, transform_indices = @transform_1, window_bounds = array<i64: 8, 25>}, {pipeline_mode = #tpu.pipeline_mode<synchronous>, transform_indices = @transform_2, window_bounds = array<i64: 8, 25>}, {transform_indices = @transform_3, window_bounds = array<i64: 8, 32>}]} {
    %c0 = arith.constant 0 : index
    %c0_0 = arith.constant 0 : index
    %0 = vector.load %arg1[%c0, %c0_0] : memref<8x32xf32, #tpu.memory_space<vmem>>, vector<8x32xf32>
    %c0_1 = arith.constant 0 : index
    %c0_2 = arith.constant 0 : index
    %1 = vector.load %arg2[%c0_1, %c0_2] : memref<8x25xf32, #tpu.memory_space<vmem>>, vector<8x25xf32>
    %c0_3 = arith.constant 0 : index
    %c0_4 = arith.constant 0 : index
    %2 = vector.load %arg3[%c0_3, %c0_4] : memref<8x25xf32, #tpu.memory_space<vmem>>, vector<8x25xf32>
    %3 = tpu.iota {dimensions = array<i32: 1>} : vector<8x32xi32>
    %c16_i32 = arith.constant 16 : i32
    %c0_i32 = arith.constant 0 : i32
    %4 = arith.cmpi eq, %c16_i32, %c0_i32 : i32
    %c1_i32 = arith.constant 1 : i32
    %5 = arith.select %4, %c1_i32, %c16_i32 : i32
    %6 = vector.broadcast %5 : i32 to vector<8x32xi32>
    %7 = arith.remsi %3, %6 : vector<8x32xi32>
    %c0_i32_5 = arith.constant 0 : i32
    %8 = vector.broadcast %c0_i32_5 : i32 to vector<8x32xi32>
    %9 = arith.cmpi ne, %7, %8 : vector<8x32xi32>
    %c0_i32_6 = arith.constant 0 : i32
    %10 = vector.broadcast %c0_i32_6 : i32 to vector<8x32xi32>
    %11 = arith.cmpi slt, %7, %10 : vector<8x32xi32>
    %c0_i32_7 = arith.constant 0 : i32
    %12 = arith.cmpi slt, %5, %c0_i32_7 : i32
    %13 = vector.broadcast %12 : i1 to vector<8x32xi1>
    %14 = vector.broadcast %13 : vector<8x32xi1> to vector<8x32xi1>
    %15 = arith.xori %11, %14 : vector<8x32xi1>
    %16 = arith.andi %15, %9 : vector<8x32xi1>
    %17 = vector.broadcast %5 : i32 to vector<8x32xi32>
    %18 = arith.addi %7, %17 : vector<8x32xi32>
    %19 = arith.select %16, %18, %7 : vector<8x32xi1>, vector<8x32xi32>
    %cst = arith.constant 1.000000e+00 : f32
    %20 = vector.broadcast %cst : f32 to vector<1x32xf32>
    %cst_8 = arith.constant 0.000000e+00 : f32
    %21 = vector.broadcast %cst_8 : f32 to vector<8x4xf32>
    %22 = tpu.concatenate %21, %0 in 1 : vector<8x4xf32>, vector<8x32xf32> -> vector<8x36xf32>
    %23 = vector.extract_strided_slice %22 {offsets = [0, 0], sizes = [8, 32], strides = [1, 1]} : vector<8x36xf32> to vector<8x32xf32>
    %c4_i32 = arith.constant 4 : i32
    %24 = vector.broadcast %c4_i32 : i32 to vector<8x32xi32>
    %25 = arith.cmpi sge, %19, %24 : vector<8x32xi32>
    %cst_9 = arith.constant 0.000000e+00 : f32
    %26 = vector.broadcast %cst_9 : f32 to vector<8x32xf32>
    %27 = arith.select %25, %23, %26 : vector<8x32xi1>, vector<8x32xf32>
    %28 = vector.extract_strided_slice %22 {offsets = [0, 2], sizes = [8, 32], strides = [1, 1]} : vector<8x36xf32> to vector<8x32xf32>
    %c2_i32 = arith.constant 2 : i32
    %29 = vector.broadcast %c2_i32 : i32 to vector<8x32xi32>
    %30 = arith.cmpi sge, %19, %29 : vector<8x32xi32>
    %cst_10 = arith.constant 0.000000e+00 : f32
    %31 = vector.broadcast %cst_10 : f32 to vector<8x32xf32>
    %32 = arith.select %30, %28, %31 : vector<8x32xi1>, vector<8x32xf32>
    %33 = vector.extract_strided_slice %22 {offsets = [0, 4], sizes = [8, 32], strides = [1, 1]} : vector<8x36xf32> to vector<8x32xf32>
    %34 = tpu.concatenate %27, %32, %33, %20 in 0 : vector<8x32xf32>, vector<8x32xf32>, vector<8x32xf32>, vector<1x32xf32> -> vector<25x32xf32>
    %cst_11 = arith.constant dense<0.000000e+00> : vector<8x32xf32>
    %35 = tpu.matmul %1, %34, %cst_11 {dimension_numbers = #tpu.dot_dimension_numbers<[1], [0], [0], [1], [0, 0, 1, 1], [], []>} : vector<8x25xf32>, vector<25x32xf32>, vector<8x32xf32> -> vector<8x32xf32>
    %cst_12 = arith.constant 0.000000e+00 : f32
    %36 = vector.broadcast %cst_12 : f32 to vector<8x32xf32>
    %37 = arith.maximumf %35, %36 : vector<8x32xf32>
    %cst_13 = arith.constant 0.000000e+00 : f32
    %38 = vector.broadcast %cst_13 : f32 to vector<8x4xf32>
    %39 = tpu.concatenate %38, %37 in 1 : vector<8x4xf32>, vector<8x32xf32> -> vector<8x36xf32>
    %40 = vector.extract_strided_slice %39 {offsets = [0, 0], sizes = [8, 32], strides = [1, 1]} : vector<8x36xf32> to vector<8x32xf32>
    %c4_i32_14 = arith.constant 4 : i32
    %41 = vector.broadcast %c4_i32_14 : i32 to vector<8x32xi32>
    %42 = arith.cmpi sge, %19, %41 : vector<8x32xi32>
    %cst_15 = arith.constant 0.000000e+00 : f32
    %43 = vector.broadcast %cst_15 : f32 to vector<8x32xf32>
    %44 = arith.select %42, %40, %43 : vector<8x32xi1>, vector<8x32xf32>
    %45 = vector.extract_strided_slice %39 {offsets = [0, 2], sizes = [8, 32], strides = [1, 1]} : vector<8x36xf32> to vector<8x32xf32>
    %c2_i32_16 = arith.constant 2 : i32
    %46 = vector.broadcast %c2_i32_16 : i32 to vector<8x32xi32>
    %47 = arith.cmpi sge, %19, %46 : vector<8x32xi32>
    %cst_17 = arith.constant 0.000000e+00 : f32
    %48 = vector.broadcast %cst_17 : f32 to vector<8x32xf32>
    %49 = arith.select %47, %45, %48 : vector<8x32xi1>, vector<8x32xf32>
    %50 = vector.extract_strided_slice %39 {offsets = [0, 4], sizes = [8, 32], strides = [1, 1]} : vector<8x36xf32> to vector<8x32xf32>
    %51 = tpu.concatenate %44, %49, %50, %20 in 0 : vector<8x32xf32>, vector<8x32xf32>, vector<8x32xf32>, vector<1x32xf32> -> vector<25x32xf32>
    %cst_18 = arith.constant dense<0.000000e+00> : vector<8x32xf32>
    %52 = tpu.matmul %2, %51, %cst_18 {dimension_numbers = #tpu.dot_dimension_numbers<[1], [0], [0], [1], [0, 0, 1, 1], [], []>} : vector<8x25xf32>, vector<25x32xf32>, vector<8x32xf32> -> vector<8x32xf32>
    %cst_19 = arith.constant 0.000000e+00 : f32
    %53 = vector.broadcast %cst_19 : f32 to vector<8x32xf32>
    %54 = arith.maximumf %52, %53 : vector<8x32xf32>
    %55 = arith.addf %54, %0 : vector<8x32xf32>
    %cst_20 = arith.constant 0.000000e+00 : f32
    %56 = vector.broadcast %cst_20 : f32 to vector<8x32xf32>
    %57 = arith.maximumf %55, %56 : vector<8x32xf32>
    %c0_21 = arith.constant 0 : index
    %c0_22 = arith.constant 0 : index
    %58 = vector.load %arg4[%c0_21, %c0_22] : memref<8x32xf32, #tpu.memory_space<vmem>>, vector<8x32xf32>
    tpu.vector_store %arg4[%c0_21, %c0_22], %57 {strides = array<i32>} : memref<8x32xf32, #tpu.memory_space<vmem>>, vector<8x32xf32>,
    return
  }
  func.func @transform_0(%arg0: i32) -> (i32, i32) {
    %c0_i32 = arith.constant 0 : i32
    %c0_i32_0 = arith.constant 0 : i32
    return %c0_i32, %arg0 : i32, i32
  }
  func.func @transform_1(%arg0: i32) -> (i32, i32) {
    %c0_i32 = arith.constant 0 : i32
    %c0_i32_0 = arith.constant 0 : i32
    %c0_i32_1 = arith.constant 0 : i32
    return %c0_i32, %c0_i32_0 : i32, i32
  }
  func.func @transform_2(%arg0: i32) -> (i32, i32) {
    %c0_i32 = arith.constant 0 : i32
    %c0_i32_0 = arith.constant 0 : i32
    %c0_i32_1 = arith.constant 0 : i32
    return %c0_i32, %c0_i32_0 : i32, i32
  }
  func.func @transform_3(%arg0: i32) -> (i32, i32) {
    %c0_i32 = arith.constant 0 : i32
    %c0_i32_0 = arith.constant 0 : i32
    return %c0_i32, %arg0 : i32, i32
  }
}

</mosaic_0001>

<bundles_post_ra>
// kernel: tpu_custom_call.1
= control target key start
LH: loop header
LB: loop body
LE: loop exit
PB: predicated region body
PF: predicated region fallthrough
CT: control target
= control target key end

     0   :  { %8 = vsyncpa [#allocation3], 0  ;;  %s357_s0 = inlined_call_operand.hbm [shape: f32[8,32], index: 0, kind: input, shape index: {}]   ;;  %s358_s1 = inlined_call_operand.hbm [shape: f32[8,25], index: 1, kind: input, shape index: {}]   ;;  %s359_s2 = inlined_call_operand.hbm [shape: f32[8,25], index: 2, kind: input, shape index: {}]   ;;  %s360_s3 = inlined_call_operand.hbm [shape: f32[8,32], index: 3, kind: output, shape index: {}]  }
   0x1   :  { %9 = vsyncpa [#allocation6], 0  ;;  %s27_s14 = sshll.u32 %s358_s1, 4  ;;  %s28_s14 = int_to_ptr.hbm [resolvable:$true] %s27_s14 }
   0x2   :  { %10 = vsyncpa [#allocation4], 0  ;;  %s297_s15 = smov [#allocation5]   ;;  %s16_s19 = sshll.u32 %s357_s0, 4  ;;  %s17_s19 = int_to_ptr.hbm [resolvable:$true] %s16_s19 }
   0x3   :  { %s29_s16 = sshll.u32 %s297_s15, 4  ;;  %s298_s20 = smov [#allocation2]   ;;  %s30_s16 = int_to_ptr.vmem [resolvable:$true] %s29_s16 }
   0x4   :  { %32 = dma.hbm_to_vmem [thread:$0]  %s28_s14, 128, %s30_s16, [#allocation6]  }
   0x5   :  { %s18_s21 = sshll.u32 %s298_s20, 4  ;;  %s38_s24 = sshll.u32 %s359_s2, 4  ;;  %s19_s21 = int_to_ptr.vmem [resolvable:$true] %s18_s21  ;;  %s39_s24 = int_to_ptr.hbm [resolvable:$true] %s38_s24 }
   0x6   :  { %21 = dma.hbm_to_vmem [thread:$0]  %s17_s19, 128, %s19_s21, [#allocation3]  }
   0x7   :  { %s299_s1 = smov [#allocation7]  }
   0x8   :  { %s40_s25 = sshll.u32 %s299_s1, 4  ;;  %s41_s25 = int_to_ptr.vmem [resolvable:$true] %s40_s25 }
   0x9   :  { %43 = dma.hbm_to_vmem [thread:$0]  %s39_s24, 128, %s41_s25, [#allocation6]  }
   0xa   :  { %291 = dma.done.wait [#allocation3], 128  }
   0xb   :  { %292 = vsyncadd [#allocation3], 4294967168 }
   0xc   :  { %293 = dma.done.wait [#allocation6], 256  }
   0xd   :  { %294 = vsyncadd [#allocation6], 4294967040  ;;  %v56_v0 = vld [vmem:[#allocation2] sm:$0xff]  ;;  %s300_s0 = smov 4   ;;  %vm94_vm0 = vcmask 1040384   ;;  %v301_v1 = vmov 1.0   ;;  %v59_v4 = vlaneseq }
   0xe   :  { %74 = vrot.lane.b32.xlu0 %v56_v0, %s300_s0  ;;  %179 = vmatpush.msk.msra.mxu0 %vm94_vm0, %v301_v1  ;;  %vm77_vm1 = vcmask 31744   ;;  %s302_s2 = smov 126   ;;  %s303_s26 = smov 124   ;;  %v57_v11 = vld [vmem:[#allocation5] sm:$0xff]  ;;  %vm90_vm4 = vcmask 203776   ;;  %v58_v18 = vld [vmem:[#allocation7] sm:$0xff] }
   0xf   :  { %183 = vmatpush.msk.msra.mxu1 %vm94_vm0, %v301_v1  ;;  %v60_v5 = vand.u32 127, %v59_v4  ;;  %s304_s27 = smov [#allocation8]   ;;  %s168_s4 = sshll.u32 %s360_s3, 4  ;;  %vm159_vm5 = vcmask 261120   ;;  %s169_s4 = int_to_ptr.hbm [resolvable:$true] %s168_s4 }
  0x10   :  { %s166_s28 = sshll.u32 %s304_s27, 4  ;;  %s167_s28 = int_to_ptr.vmem [resolvable:$true] %s166_s28 }
  0x11   :  { %v65_v6 = vand.u32 15, %v60_v5 }
  0x13   :  { %vm335_vm2 = vcmp.ge.s32.totalorder %v65_v6, 2  ;;  %vm339_vm3 = vcmp.ge.s32.totalorder %v65_v6, 4 }
  0x80   :  { %v75_v2 = vpop.permute.xlu0 %74 }
  0x81   :  { %v78_v3 = vsel %vm77_vm1, 0.0, %v75_v2 }
  0x82   :  { %83 = vrot.lane.b32.xlu1 %v78_v3, %s302_s2  ;;  %87 = vrot.lane.b32.xlu0 %v78_v3, %s303_s26 }
  0xf4   :  { %v88_v7 = vpop.permute.xlu0 %87  ;;  %v84_v9 = vpop.permute.xlu1 %83 }
  0xf5   :  { %111 = vmatpush.msra.mxu0 %v88_v7 }
  0xf7   :  { %180 = vmatpush.msk.msra.mxu0 %vm335_vm2, %v84_v9 }
  0xf9   :  { %181 = vmatpush.msk.msra.mxu0 %vm339_vm3, %v78_v3 }
  0xfa   :  { %182 = vmatmul.msk.f32.vlgmr.msra.gmra.mxu0 %vm90_vm4, %v57_v11 }
 0x177   :  { %v115_v12 = vpop.f32.mrf.mxu0 }
 0x178   :  { %v118_v13 = vmax.f32 %v115_v12, 0.0 }
 0x17a   :  { %120 = vrot.lane.b32.xlu1 %v118_v13, %s300_s0 }
 0x1ec   :  { %v121_v14 = vpop.permute.xlu1 %120 }
 0x1ed   :  { %v123_v15 = vsel %vm77_vm1, 0.0, %v121_v14 }
 0x1ee   :  { %130 = vrot.lane.b32.xlu2 %v123_v15, %s303_s26 }
 0x1f6   :  { %126 = vrot.lane.b32.xlu2 %v123_v15, %s302_s2 }
 0x248   :  { %v131_v16 = vpop.permute.xlu2 %130 }
 0x249   :  { %149 = vmatpush.msra.mxu1 %v131_v16 }
 0x250   :  { %v127_v17 = vpop.permute.xlu2 %126 }
 0x251   :  { %184 = vmatpush.msk.msra.mxu1 %vm335_vm2, %v127_v17 }
 0x253   :  { %185 = vmatpush.msk.msra.mxu1 %vm339_vm3, %v123_v15 }
 0x254   :  { %186 = vmatmul.msk.f32.vlgmr.msra.gmra.mxu1 %vm90_vm4, %v58_v18 }
 0x2d1   :  { %v153_v19 = vpop.f32.mrf.mxu1 }
 0x2d2   :  { %v156_v20 = vmax.f32 %v153_v19, 0.0 }
 0x2d4   :  { %v157_v21 = vadd.f32 %v156_v20, %v56_v0 }
 0x2d6   :  { %v158_v22 = vmax.f32 %v157_v21, 0.0 }
 0x2d8   :  { %160 = vst.msk [vmem:[#allocation8] sm:$0xff] %vm159_vm5, %v158_v22 }
 0x2d9   :  { %171 = dma.vmem_to_hbm [thread:$0]  %s167_s28, 128, %s169_s4, [#allocation4]  }
 0x2da   :  { %295 = dma.done.wait [#allocation4], 128  }
 0x2db   :  { %296 = vsyncadd [#allocation4], 4294967168 }
 0x2dc   :  { %176 = vsyncpa [#allocation3], 1 }
 0x2dd   :  { %177 = vsyncpa [#allocation6], 1 }
 0x2de   :  { %178 = vsyncpa [#allocation4], 1 }

</bundles_post_ra>
